<compile_context>
chip_gen: v7x
topology: tpu7x:2x2x1
jax: 0.10.0
libtpu: 0.0.40
codegen_flags: <defaults>
</compile_context>

<pallas_src>
import functools

import jax
import jax.numpy as jnp
from jax.experimental import pallas as pl
from jax.experimental.pallas import tpu as pltpu


# ----------------------------- Pallas kernel ---------------------------------
def _mlp_kernel(x_ref, w1t_ref, b1_ref, w2t_ref, b2_ref, o_ref):
    # x_ref:   (C_in, TN)   channels-first tile of points (as stored in HBM)
    # w1t_ref: (H, C_in)    full, constant across grid
    # b1_ref:  (H, 1)       float32
    # w2t_ref: (C_out, H)   full, constant across grid
    # b2_ref:  (C_out, 1)   float32
    # o_ref:   (C_out, TN)  lane-dense output tile (lane dim = TN, multiple of 128)
    h = jnp.dot(w1t_ref[...], x_ref[...], preferred_element_type=jnp.float32)
    h = jnp.maximum(h + b1_ref[...], 0.0)          # ReLU after first linear only
    out = jnp.dot(w2t_ref[...], h.astype(w2t_ref.dtype),
                  preferred_element_type=jnp.float32)
    o_ref[...] = (out + b2_ref[...]).astype(o_ref.dtype)


@functools.partial(jax.jit, static_argnames=("tile_n", "compute_dtype"))
def proposal_mlp(features, w1t, b1, w2t, b2, *, tile_n=8192, compute_dtype=None):
    """features: (B, C_in, N) channels-first -> (B, C_out, N) via Linear-ReLU-Linear."""
    B, C_in, N = features.shape
    H = w1t.shape[0]
    C_out = w2t.shape[0]

    # Streaming dtype: follow the input unless the caller explicitly overrides it.
    # (An astype on a large f32 feature tensor is a full extra HBM pass — avoid it.)
    cd = jnp.dtype(features.dtype if compute_dtype is None else compute_dtype)

    # Lane-dense tile along the point axis (multiple of 128).  No padding of the
    # feature tensor and no output slice: Pallas masks the ragged last block.
    n_lanes = pl.cdiv(N, 128) * 128
    tn = max(128, (min(tile_n, n_lanes) // 128) * 128)
    if B == 1 and n_lanes >= 256:
        # Keep at least 2 grid steps so both TensorCores get work (v7x megacore).
        tn = min(tn, max(128, ((n_lanes // 2) // 128) * 128))
    grid = (B, pl.cdiv(N, tn))

    if features.dtype != cd:
        features = features.astype(cd)
    w1t = w1t.astype(cd)
    w2t = w2t.astype(cd)
    b1 = b1.astype(jnp.float32)
    b2 = b2.astype(jnp.float32)

    # Advisory cost estimate (lets XLA schedule producer/epilogue around the call).
    itemsize = cd.itemsize
    flops = 2 * B * N * (C_in * H + H * C_out) + B * N * (2 * H + C_out)
    bytes_accessed = (B * N * (C_in + C_out) * itemsize
                      + (H * C_in + C_out * H) * itemsize
                      + (H + C_out) * 4)

    # Double-buffered input + output tiles; only raise the scoped-VMEM limit for
    # very large tiles (>~24 MiB), the default is plenty for <=16k-point f32 tiles.
    dbuf_bytes = 2 * tn * (C_in + C_out) * itemsize
    vmem_limit = dbuf_bytes + (8 << 20) if dbuf_bytes > (24 << 20) else None

    return pl.pallas_call(
        _mlp_kernel,
        out_shape=jax.ShapeDtypeStruct((B, C_out, N), cd),
        grid_spec=pltpu.PrefetchScalarGridSpec(
            num_scalar_prefetch=0,
            grid=grid,
            in_specs=[
                pl.BlockSpec((pl.Squeezed(), C_in, tn), lambda b, n: (b, 0, n)),
                pl.BlockSpec((H, C_in), lambda b, n: (0, 0)),
                pl.BlockSpec((H, 1), lambda b, n: (0, 0)),
                pl.BlockSpec((C_out, H), lambda b, n: (0, 0)),
                pl.BlockSpec((C_out, 1), lambda b, n: (0, 0)),
            ],
            out_specs=pl.BlockSpec((pl.Squeezed(), C_out, tn),
                                   lambda b, n: (b, 0, n)),
        ),
        compiler_params=pltpu.CompilerParams(
            dimension_semantics=("parallel", "parallel"),
            vmem_limit_bytes=vmem_limit,
        ),
        cost_estimate=pl.CostEstimate(flops=flops, transcendentals=0,
                                      bytes_accessed=bytes_accessed),
    )(features, w1t, b1, w2t, b2)


# ----------------------------- ProposalLayer ---------------------------------
class ProposalLayerPallas:
    """JAX/Pallas version of ProposalLayer.forward."""

    def __init__(self, mlps, num_classes, box_dof, key, *, tile_n=8192,
                 compute_dtype=None):
        # mlps = [C_in, H]; output channels = num_classes * (box_dof + 1)
        self.num_classes = num_classes
        self.box_dof = box_dof
        self.tile_n = tile_n                # v7x: 16384 is still well under VMEM
        self.compute_dtype = compute_dtype  # None -> stream in the features' dtype
        c_in, hidden = mlps
        c_out = num_classes * (box_dof + 1)
        k1, k2, k3, k4 = jax.random.split(key, 4)
        # Parameters stored pre-transposed for the channels-first kernel layout.
        self.w1_t = (jax.random.normal(k1, (hidden, c_in), jnp.float32)
                     / jnp.sqrt(jnp.float32(c_in)))            # (H, C_in)
        self.b1 = jax.random.normal(k2, (hidden, 1), jnp.float32) * 0.01
        self.w2_t = (jax.random.normal(k3, (c_out, hidden), jnp.float32)
                     / jnp.sqrt(jnp.float32(hidden)))          # (C_out, H)
        self.b2 = jax.random.normal(k4, (c_out, 1), jnp.float32) * 0.01

    def __call__(self, points, features, *, channels_first=False):
        # features: (B, C_in, N) channels-first — consumed directly by the kernel,
        # no XLA permute pre-pass.
        B, _, N = features.shape
        out_cf = proposal_mlp(features, self.w1_t, self.b1, self.w2_t, self.b2,
                              tile_n=self.tile_n, compute_dtype=self.compute_dtype)
        # (B, C_out, N) -> (B, NC, BOX_DOF+1, N): pure reshape, no data movement.
        prop_cf = out_cf.reshape(B, self.num_classes, self.box_dof + 1, N)
        if channels_first:
            # Preferred production path: no transpose epilogue (no HBM re-stream).
            # boxes: (B, NC, BOX_DOF, N), scores: (B, NC, N)
            return prop_cf[:, :, : self.box_dof, :], prop_cf[:, :, self.box_dof, :]
        # PyTorch-compatible layout (semantics of the original forward).
        proposals = jnp.transpose(prop_cf, (0, 3, 1, 2))       # (B, N, NC, BOX_DOF+1)
        boxes = proposals[..., : self.box_dof]                  # (B, N, NC, BOX_DOF)
        scores = proposals[..., self.box_dof]                   # (B, N, NC)
        return boxes, scores

    # Pure-JAX reference of the same forward (for correctness check).
    def reference(self, points, features):
        x = jnp.transpose(features, (0, 2, 1)).astype(jnp.float32)   # (B, N, C_in)
        h = jnp.maximum(x @ self.w1_t.T + self.b1[:, 0], 0.0)
        proposals = h @ self.w2_t.T + self.b2[:, 0]
        B, N, _ = proposals.shape
        proposals = proposals.reshape(B, N, self.num_classes, self.box_dof + 1)
        return proposals[..., : self.box_dof], proposals[..., self.box_dof]


# ---------------------------------- main --------------------------------------
if __name__ == "__main__":
    # Small, config-consistent shapes:
    #   cfg.PROPOSAL.MLPS = [32, 32], cfg.NUM_CLASSES = 4, cfg.BOX_DOF = 7
    # N deliberately NOT a multiple of 128 to exercise the masked ragged-tail path
    # (no pad / no slice around the kernel).
    B, C_IN, N = 2, 32, 200
    NUM_CLASSES, BOX_DOF = 4, 7
    MLPS = [C_IN, 32]

    key = jax.random.PRNGKey(0)
    k_feat, k_pts, k_params = jax.random.split(key, 3)
    features = jax.random.normal(k_feat, (B, C_IN, N), jnp.float32)  # (B, C, N)
    points = jax.random.normal(k_pts, (B, N, 3), jnp.float32)        # unused by forward

    layer = ProposalLayerPallas(MLPS, NUM_CLASSES, BOX_DOF, k_params)

    boxes, scores = layer(points, features)                          # torch-layout path
    boxes_cf, scores_cf = layer(points, features, channels_first=True)  # zero-epilogue path
    boxes, scores, boxes_cf, scores_cf = jax.block_until_ready(
        (boxes, scores, boxes_cf, scores_cf))

    ref_boxes, ref_scores = layer.reference(points, features)
    assert boxes.shape == (B, N, NUM_CLASSES, BOX_DOF)
    assert scores.shape == (B, N, NUM_CLASSES)
    assert jnp.allclose(boxes, ref_boxes, atol=1e-4, rtol=1e-4)
    assert jnp.allclose(scores, ref_scores, atol=1e-4, rtol=1e-4)
    # Channels-first outputs carry the same data (layout-only difference).
    assert boxes_cf.shape == (B, NUM_CLASSES, BOX_DOF, N)
    assert scores_cf.shape == (B, NUM_CLASSES, N)
    assert jnp.allclose(jnp.transpose(boxes_cf, (0, 3, 1, 2)), ref_boxes,
                        atol=1e-4, rtol=1e-4)
    assert jnp.allclose(jnp.transpose(scores_cf, (0, 2, 1)), ref_scores,
                        atol=1e-4, rtol=1e-4)

    # TODO(synk): `inference()` (softmax + topk + gather) is host-side post-processing,
    # not the hot path; left in plain JAX if ever needed.
    print("KERNEL_OK")
</pallas_src>

<mosaic_0001>
module attributes {stable_mosaic.version = 11 : i64} {
  func.func @_mlp_kernel(%arg0: i32, %arg1: i32, %arg2: memref<1x32x256xf32, #tpu.memory_space<vmem>>, %arg3: memref<32x32xf32, #tpu.memory_space<vmem>>, %arg4: memref<32x1xf32, #tpu.memory_space<vmem>>, %arg5: memref<32x32xf32, #tpu.memory_space<vmem>>, %arg6: memref<32x1xf32, #tpu.memory_space<vmem>>, %arg7: memref<1x32x256xf32, #tpu.memory_space<vmem>>) attributes {dimension_semantics = [#tpu.dimension_semantics<parallel>, #tpu.dimension_semantics<parallel>], iteration_bounds = array<i64: 2, 1>, scalar_prefetch = 0 : i64, scratch_operands = 0 : i64, tpu.core_type = #tpu.core_type<tc>, window_params = [{transform_indices = @transform_0, window_bounds = array<i64: 1, 32, 256>}, {pipeline_mode = #tpu.pipeline_mode<synchronous>, transform_indices = @transform_1, window_bounds = array<i64: 32, 32>}, {pipeline_mode = #tpu.pipeline_mode<synchronous>, transform_indices = @transform_2, window_bounds = array<i64: 32, 1>}, {pipeline_mode = #tpu.pipeline_mode<synchronous>, transform_indices = @transform_3, window_bounds = array<i64: 32, 32>}, {pipeline_mode = #tpu.pipeline_mode<synchronous>, transform_indices = @transform_4, window_bounds = array<i64: 32, 1>}, {transform_indices = @transform_5, window_bounds = array<i64: 1, 32, 256>}]} {
    %c0 = arith.constant 0 : index
    %c0_0 = arith.constant 0 : index
    %0 = vector.load %arg3[%c0, %c0_0] : memref<32x32xf32, #tpu.memory_space<vmem>>, vector<32x32xf32>
    %c0_1 = arith.constant 0 : index
    %c0_2 = arith.constant 0 : index
    %c0_3 = arith.constant 0 : index
    %1 = vector.load %arg2[%c0_1, %c0_2, %c0_3] : memref<1x32x256xf32, #tpu.memory_space<vmem>>, vector<1x32x256xf32>
    %2 = vector.shape_cast %1 : vector<1x32x256xf32> to vector<32x256xf32>
    %cst = arith.constant dense<0.000000e+00> : vector<32x256xf32>
    %3 = tpu.matmul %0, %2, %cst {dimension_numbers = #tpu.dot_dimension_numbers<[1], [0], [0], [1], [0, 0, 1, 1], [], []>} : vector<32x32xf32>, vector<32x256xf32>, vector<32x256xf32> -> vector<32x256xf32>
    %c0_4 = arith.constant 0 : index
    %c0_5 = arith.constant 0 : index
    %4 = vector.load %arg4[%c0_4, %c0_5] : memref<32x1xf32, #tpu.memory_space<vmem>>, vector<32x1xf32>
    %5 = vector.broadcast %4 : vector<32x1xf32> to vector<32x256xf32>
    %6 = arith.addf %3, %5 : vector<32x256xf32>
    %cst_6 = arith.constant 0.000000e+00 : f32
    %7 = vector.broadcast %cst_6 : f32 to vector<32x256xf32>
    %8 = arith.maximumf %6, %7 : vector<32x256xf32>
    %c0_7 = arith.constant 0 : index
    %c0_8 = arith.constant 0 : index
    %9 = vector.load %arg5[%c0_7, %c0_8] : memref<32x32xf32, #tpu.memory_space<vmem>>, vector<32x32xf32>
    %cst_9 = arith.constant dense<0.000000e+00> : vector<32x256xf32>
    %10 = tpu.matmul %9, %8, %cst_9 {dimension_numbers = #tpu.dot_dimension_numbers<[1], [0], [0], [1], [0, 0, 1, 1], [], []>} : vector<32x32xf32>, vector<32x256xf32>, vector<32x256xf32> -> vector<32x256xf32>
    %c0_10 = arith.constant 0 : index
    %c0_11 = arith.constant 0 : index
    %11 = vector.load %arg6[%c0_10, %c0_11] : memref<32x1xf32, #tpu.memory_space<vmem>>, vector<32x1xf32>
    %12 = vector.broadcast %11 : vector<32x1xf32> to vector<32x256xf32>
    %13 = arith.addf %10, %12 : vector<32x256xf32>
    %c0_12 = arith.constant 0 : index
    %c0_13 = arith.constant 0 : index
    %c0_14 = arith.constant 0 : index
    %14 = vector.load %arg7[%c0_12, %c0_13, %c0_14] : memref<1x32x256xf32, #tpu.memory_space<vmem>>, vector<1x32x256xf32>
    %15 = vector.shape_cast %14 : vector<1x32x256xf32> to vector<32x256xf32>
    %16 = vector.shape_cast %13 : vector<32x256xf32> to vector<1x32x256xf32>
    tpu.vector_store %arg7[%c0_12, %c0_13, %c0_14], %16 {strides = array<i32>} : memref<1x32x256xf32, #tpu.memory_space<vmem>>, vector<1x32x256xf32>,
    return
  }
  func.func @transform_0(%arg0: i32, %arg1: i32) -> (i32, i32, i32) {
    %c0_i32 = arith.constant 0 : i32
    %c0_i32_0 = arith.constant 0 : i32
    return %arg0, %c0_i32, %arg1 : i32, i32, i32
  }
  func.func @transform_1(%arg0: i32, %arg1: i32) -> (i32, i32) {
    %c0_i32 = arith.constant 0 : i32
    %c0_i32_0 = arith.constant 0 : i32
    %c0_i32_1 = arith.constant 0 : i32
    return %c0_i32, %c0_i32_0 : i32, i32
  }
  func.func @transform_2(%arg0: i32, %arg1: i32) -> (i32, i32) {
    %c0_i32 = arith.constant 0 : i32
    %c0_i32_0 = arith.constant 0 : i32
    %c0_i32_1 = arith.constant 0 : i32
    return %c0_i32, %c0_i32_0 : i32, i32
  }
  func.func @transform_3(%arg0: i32, %arg1: i32) -> (i32, i32) {
    %c0_i32 = arith.constant 0 : i32
    %c0_i32_0 = arith.constant 0 : i32
    %c0_i32_1 = arith.constant 0 : i32
    return %c0_i32, %c0_i32_0 : i32, i32
  }
  func.func @transform_4(%arg0: i32, %arg1: i32) -> (i32, i32) {
    %c0_i32 = arith.constant 0 : i32
    %c0_i32_0 = arith.constant 0 : i32
    %c0_i32_1 = arith.constant 0 : i32
    return %c0_i32, %c0_i32_0 : i32, i32
  }
  func.func @transform_5(%arg0: i32, %arg1: i32) -> (i32, i32, i32) {
    %c0_i32 = arith.constant 0 : i32
    %c0_i32_0 = arith.constant 0 : i32
    return %arg0, %c0_i32, %arg1 : i32, i32, i32
  }
}

</mosaic_0001>

<bundles_post_ra>
// kernel: proposal_mlp.1
= control target key start
LH: loop header
LB: loop body
LE: loop exit
PB: predicated region body
PF: predicated region fallthrough
CT: control target
= control target key end

     0   :  { %10 = vsyncpa [#allocation3], 0  ;;  %s1155_s0 = inlined_call_operand.hbm [shape: f32[2,32,200], index: 0, kind: input, shape index: {}]   ;;  %s1156_s1 = inlined_call_operand.vmem [shape: f32[32,32], index: 1, kind: input, shape index: {}]   ;;  %s1157_s2 = inlined_call_operand.vmem [shape: f32[32,1], index: 2, kind: input, shape index: {}]   ;;  %s1158_s3 = inlined_call_operand.vmem [shape: f32[32,32], index: 3, kind: input, shape index: {}]   ;;  %s1159_s4 = inlined_call_operand.vmem [shape: f32[32,1], index: 4, kind: input, shape index: {}]   ;;  %s1160_s5 = inlined_call_operand.hbm [shape: f32[2,32,200], index: 5, kind: output, shape index: {}]  }
   0x1   :  { %12 = vsyncpa [#allocation3 + $0x1], 0 }
   0x2   :  { %13 = vsyncpa [#allocation4], 0 }
   0x3   :  { %15 = vsyncpa [#allocation4 + $0x1], 0  ;;  %s912_s18 = smov 0   ;;  %s914_s19 = smov 0  }
   0x4   :  { %s916_s20 = smov 0   ;;  %s918_s21 = smov 0  }
   0x5   :  { %s920_s22 = smov 0   ;;  %s922_s23 = smov 0  }
   0x6 LB: > { %s649_s24 = sadd.s32 4294967295, %s872_s23   ;;  %s650_s25 = sadd.s32 4294967294, %s872_s23   ;;  %s872_s23 = sphi %s922_s23, %s21_s23   ;;  %s868_s22 = sphi %s920_s22, %s1175_s22   ;;  %s864_s21 = sphi %s918_s21, %s1174_s21   ;;  %s860_s20 = sphi %s916_s20, %s1173_s20   ;;  %s856_s19 = sphi %s914_s19, %s1172_s19   ;;  %s852_s18 = sphi %s912_s18, %s1171_s18  }
   0x7   : > { %s33_s26 = sadd.s32 1, %s868_s22  ;;  %s42_s27 = sadd.s32 1, %s860_s20 }
   0x8   : > { %p35_p0 = scmp.ge.s32.totalorder %s33_s26, 2  ;;  %p49_p1 = scmp.ne.s32.totalorder %s860_s20, %s856_s19 }
   0x9   : > { %p50_p2 = scmp.eq.s32.totalorder %s872_s23, 0  ;;  %p55_p3 = scmp.ne.s32.totalorder %s856_s19, %s852_s18 }
   0xa   : > { %s1177_s26 = smov (%p35_p0, %s33_s26), 0  ;;  %p56_p5 = scmp.eq.s32.totalorder %s649_s24, 0 }
   0xb   : > { %p953_p4 = por %p50_p2, %p49_p1  ;;  %s37_s29 = ssub.s32 %s868_s22, %s1177_s26 }
   0xc   : > { %p165_p6 = scmp.eq.s32.totalorder %s649_s24, 1  ;;  %p40_p7 = scmp.eq.s32.totalorder %s37_s29, 0 }
   0xd   : > { %p959_p8 = por %p56_p5, %p55_p3  ;;  %p171_p10 = scmp.eq.s32.totalorder %s650_s25, 1 }
   0xe   : > { %p963_p9 = por %p165_p6, %p49_p1  ;;  %p702_p13 = scmp.lt.s32.totalorder %s872_s23, 2 }
   0xf   : > { %s968_s7 = scalar_select %p40_p7, %s860_s20, %s42_s27  }
  0x10   : > { %s1164_s6 = scalar_select %p963_p9, 1, 0 }
  0x11   : > { %p970_p11 = por %p171_p10, %p55_p3  ;;  %s203_s9 = sand.u32 1, %s860_s20  }
  0x12   : > { %s653_s10 = sshll.u32 %s203_s9, 6  ;;  %s672_s11 = sshll.u32 %s868_s22, 10 }
  0x13   : > { %s1165_s8 = scalar_select %p970_p11, 1, 0 }
  0x14   : > { %s981_s14 = scalar_lea.hbm %s1155_s0, %s672_s11  ;;  %s207_s15 = scalar_lea.vmem [#allocation2], %s653_s10 }
  0x15   : > { %s216_s16 = sshll.u32 %s207_s15, 4  ;;  %p987_p0 = pnand %p702_p13, %p953_p4  ;;  %s983_s16 = int_to_ptr.vmem [resolvable:$true] %s216_s16 }
  0x16   : > { %s992_s24 = scalar_lea.sflag [#allocation3], %s203_s9  ;;  %s760_s25 = scalar_lea.hbm %s981_s14, 1024 }
  0x17   : > { %p761_p2 = scmp.ne.s32.totalorder %s981_s14, %s760_s25  ;;  %p762_p3 = pneg %p987_p0 }
  0x18   : > { %s765_s28 = scalar_lea.hbm %s1155_s0, 2048  ;;  %p766_p4 = scmp.lt.u32.totalorder %s981_s14, %s1155_s0 }
  0x19   : > { %p763_p5 = pnand %p762_p3, %p761_p2  ;;  %p767_p7 = scmp.lt.u32.totalorder %s765_s28, %s760_s25 }
  0x1a   : > { %p769_p13 = scmp.lt.u32.totalorder %s760_s25, %s981_s14 }
  0x1b   : > { %p764_p6 = pneg %p763_p5  ;;  %p768_p10 = por %p767_p7, %p766_p4 }
  0x1d   : > { %p770_p12 = por %p769_p13, %p768_p10 }
  0x1f   : > { %p771_p1 = pnand %p770_p12, %p764_p6 }
  0x21   : > { %774 = shalt.err (!%p771_p1)
}
  0x22   : > { %s775_s9 = scalar_lea.vmem %s983_s16, 1024  ;;  %s874_s12 = smov [#allocation2]  }
  0x23   : > { %p776_p2 = scmp.ne.s32.totalorder %s983_s16, %s775_s9  ;;  %s780_s13 = sshll.u32 %s874_s12, 4  ;;  %s781_s13 = int_to_ptr.vmem [resolvable:$false] %s780_s13 }
  0x24   : > { %s782_s15 = scalar_lea.vmem %s781_s13, 2048  ;;  %p783_p9 = scmp.lt.s32.totalorder %s983_s16, %s781_s13 }
  0x25   : > { %p778_p5 = pnand %p776_p2, %p762_p3  ;;  %p784_p4 = scmp.lt.s32.totalorder %s782_s15, %s775_s9 }
  0x27   : > { %p779_p11 = pneg %p778_p5  ;;  %p785_p7 = por %p784_p4, %p783_p9 }
  0x29   : > { %p786_p10 = pnand %p785_p7, %p779_p11 }
  0x2b   : > { %789 = shalt.err (!%p786_p10)
}
  0x2c   : > { %s875_s25 = smov 256   ;;  %s876_s27 = smov 16  }
  0x2d   : > { %697 = dma.hbm_to_vmem [thread:$0]  (!%p987_p0), %s981_s14, 1024, %s983_s16, %s992_s24, %s875_s25, %s875_s25, %s876_s27  }
  0x2e   : > { %p224_p12 = scmp.lt.s32.totalorder %s872_s23, 3  ;;  %p1167_p1 = scmp.ge.s32.totalorder %s872_s23, 1 }
  0x30   : > { %p225_p3 = pnand %p1167_p1, %p224_p12 }
  0x31   : > { %s1024_s29 = sand.u32 (!%p225_p3), 1, %s856_s19  }
  0x32   : > { %228 = sbr.rel (%p225_p3) target bundleno = 546 (0x222), region = 40  ;;  %s657_s28 = sshll.u32 (!%p225_p3), %s1024_s29, 6 }
  0x33   : > { %s231_s10 = scalar_lea.sflag (!%p225_p3), [#allocation3], %s1024_s29  ;;  %s234_s11 = scalar_lea.vmem (!%p225_p3), [#allocation2], %s657_s28 }
  0x39   : > { %843 = dma.done.wait (%p959_p8), %s231_s10, 1024  }
  0x3a   : > { %845 = vsyncadd (%p959_p8), %s231_s10, 4294966272  ;;  %v877_v0 = vmov 0.0   ;;  %v878_v1 = vmov 0   ;;  %v268_v2 = vld [vmem:[%s234_s11 + $0x8] sm:$0xff]  ;;  %v270_v3 = vld [vmem:[%s234_s11 + $0x18] sm:$0xff]  ;;  %vm299_vm0 = vcmask 261120  }
  0x3b   : > { %376 = vmatprep.mubr.f32.mxu0 %v877_v0  ;;  %758 = vset.pattern.permute.xlu0 %v878_v1  ;;  %v267_v4 = vld [vmem:[%s234_s11] sm:$0xff]  ;;  %v674_v5 = vpack.c.bf16 %v270_v3, %v268_v2  ;;  %v269_v6 = vld [vmem:[%s234_s11 + $0x10] sm:$0xff]  ;;  %v272_v7 = vld [vmem:[%s234_s11 + $0x28] sm:$0xff]  ;;  %s260_s12 = scalar_lea.vmem [#allocation5], %s657_s28  ;;  %s673_s15 = sshll.u32 %s864_s21, 10 }
  0x3c   : > { %759 = vset.pattern.permute.xlu1 %v878_v1  ;;  %513 = vmatprep.mubr.f32.mxu1 %v877_v0  ;;  %v274_v8 = vld [vmem:[%s234_s11 + $0x38] sm:$0xff]  ;;  %v676_v9 = vpack.c.bf16 %v269_v6, %v267_v4  ;;  %v271_v11 = vld [vmem:[%s234_s11 + $0x20] sm:$0xff]  ;;  %v273_v12 = vld [vmem:[%s234_s11 + $0x30] sm:$0xff]  ;;  %s562_s13 = sshll.u32 %s260_s12, 4  ;;  %s1106_s27 = scalar_lea.hbm %s1160_s5, %s673_s15  ;;  %s1101_s13 = int_to_ptr.vmem [resolvable:$true] %s562_s13 }
  0x3d   : > { %v678_v10 = vpack.c.bf16 %v274_v8, %v272_v7  ;;  %675 = vmatprep.subr.bf16.mxu0 %v674_v5  ;;  %v680_v13 = vpack.c.bf16 %v273_v12, %v271_v11  ;;  %v275_v14 = vld [vmem:[%s1157_s2] sm:$0xff]  ;;  %v277_v15 = vld [vmem:[%s1157_s2 + $0x10] sm:$0xff]  ;;  %v276_v16 = vld [vmem:[%s1157_s2 + $0x8] sm:$0xff]  ;;  %s547_s21 = scalar_lea.sflag [#allocation4], %s1024_s29  ;;  %s790_s10 = scalar_lea.vmem %s1101_s13, 1024 }
  0x3e   : > { %677 = vmatpush1.bf16.msra.mxu0 %v676_v9  ;;  %281 = vperm.xlu0 %758, %v275_v14   ;;  %v278_v17 = vld [vmem:[%s1157_s2 + $0x18] sm:$0xff]  ;;  %v263_v18 = vld [vmem:[%s1156_s1] sm:$0xff]  ;;  %v414_v20 = vld [vmem:[%s1159_s4 + $0x8] sm:$0xff]  ;;  %p791_p8 = scmp.ne.s32.totalorder %s1101_s13, %s790_s10  ;;  %p1168_p9 = scmp.ne.s32.totalorder %s1164_s6, 0 }
  0x3f   : > { %679 = vmatprep.subr.bf16.mxu0 %v678_v10  ;;  %291 = vperm.xlu1 %759, %v277_v15   ;;  %v413_v19 = vld [vmem:[%s1159_s4] sm:$0xff]  ;;  %v264_v21 = vld [vmem:[%s1156_s1 + $0x8] sm:$0xff]  ;;  %v415_v22 = vld [vmem:[%s1159_s4 + $0x10] sm:$0xff]  ;;  %s879_s11 = smov [#allocation5]  }
  0x40   : > { %v416_v23 = vld [vmem:[%s1159_s4 + $0x18] sm:$0xff]  ;;  %v265_v24 = vld [vmem:[%s1156_s1 + $0x10] sm:$0xff]  ;;  %v409_v58 = vld [vmem:[%s1158_s3] sm:$0xff]  ;;  %p792_p11 = pnand %p791_p8, %p1168_p9  ;;  %s794_s30 = sshll.u32 %s879_s11, 4  ;;  %s795_s30 = int_to_ptr.vmem [resolvable:$false] %s794_s30 }
  0x41   : > { %v266_v25 = vld [vmem:[%s1156_s1 + $0x18] sm:$0xff]  ;;  %v410_v59 = vld [vmem:[%s1158_s3 + $0x8] sm:$0xff]  ;;  %v411_v60 = vld [vmem:[%s1158_s3 + $0x10] sm:$0xff]  ;;  %s796_s14 = scalar_lea.vmem %s795_s30, 2048  ;;  %p797_p6 = scmp.lt.s32.totalorder %s1101_s13, %s795_s30 }
  0x42   : > { %681 = vmatpush1.bf16.msra.mxu0 %v680_v13  ;;  %286 = vperm.xlu0 %758, %v276_v16   ;;  %v412_v61 = vld [vmem:[%s1158_s3 + $0x18] sm:$0xff]  ;;  %p793_p0 = pneg %p792_p11  ;;  %p798_p13 = scmp.lt.s32.totalorder %s796_s14, %s790_s10 }
  0x43   : > { %296 = vperm.xlu1 %759, %v278_v17  }
  0x44   : > { %p799_p2 = por %p798_p13, %p797_p6 }
  0x45   : > { %659 = vmatmul.mubr.msk.f32.vlgmr.msra.gmra.mrb[0].mxu0 %vm299_vm0, %v263_v18 }
  0x46   : > { %382 = vmatprep.mubr.f32.mxu0 %v877_v0  ;;  %419 = vperm.xlu0 %758, %v413_v19   ;;  %p800_p5 = pnand %p799_p2, %p793_p0 }
  0x47   : > { %424 = vperm.xlu1 %759, %v414_v20  }
  0x49   : > { %660 = vmatmul.mubr.msk.f32.gmra.mrb[2].mxu0 %vm299_vm0, %v264_v21 }
  0x4a   : > { %388 = vmatprep.mubr.f32.mxu0 %v877_v0  ;;  %429 = vperm.xlu0 %758, %v415_v22  }
  0x4b   : > { %434 = vperm.xlu1 %759, %v416_v23  }
  0x4d   : > { %661 = vmatmul.mubr.msk.f32.gmra.mrb[4].mxu0 %vm299_vm0, %v265_v24 }
  0x4e   : > { %394 = vmatprep.mubr.f32.mxu0 %v877_v0 }
  0x51   : > { %662 = vmatmul.mubr.msk.f32.gmra.mrb[6].mxu0 %vm299_vm0, %v266_v25 }
  0xbd   : > { %v282_v26 = vpop.permute.xlu0 %281 }
  0xbe   : > { %v292_v35 = vpop.permute.xlu1 %291 }
  0xc1   : > { %v287_v30 = vpop.permute.xlu0 %286 }
  0xc2   : > { %v297_v46 = vpop.permute.xlu1 %296 }
  0xc5   : > { %v420_v62 = vpop.permute.xlu0 %419 }
  0xc6   : > { %v425_v4 = vpop.permute.xlu1 %424 }
  0xc9   : > { %v430_v8 = vpop.permute.xlu0 %429 }
  0xca   : > { %v435_v13 = vpop.permute.xlu1 %434 }
 0x118   : > { %v378_v27 = vpop.f32.mrb[0].mxu0 }
 0x119   : > { %v380_v28 = vpop.f32.mrb[1].mxu0  ;;  %v379_v29 = vadd.f32 %v378_v27, %v282_v26 }
 0x11a   : > { %v381_v31 = vadd.f32 %v380_v28, %v282_v26 }
 0x11b   : > { %v401_v37 = vmax.f32 %v379_v29, 0.0 }
 0x11c   : > { %v384_v32 = vpop.f32.mrb[2].mxu0  ;;  %v402_v39 = vmax.f32 %v381_v31, 0.0 }
 0x11d   : > { %v385_v33 = vadd.f32 %v384_v32, %v287_v30  ;;  %v386_v34 = vpop.f32.mrb[3].mxu0 }
 0x11e   : > { %v387_v36 = vadd.f32 %v386_v34, %v287_v30 }
 0x11f   : > { %v403_v38 = vmax.f32 %v385_v33, 0.0 }
 0x120   : > { %v404_v40 = vmax.f32 %v387_v36, 0.0  ;;  %v390_v41 = vpop.f32.mrb[4].mxu0 }
 0x121   : > { %v392_v42 = vpop.f32.mrb[5].mxu0  ;;  %v684_v43 = vpack.c.bf16 %v403_v38, %v401_v37  ;;  %v391_v45 = vadd.f32 %v390_v41, %v292_v35 }
 0x122   : > { %v682_v44 = vpack.c.bf16 %v404_v40, %v402_v39  ;;  %v393_v47 = vadd.f32 %v392_v42, %v292_v35 }
 0x123   : > { %v405_v52 = vmax.f32 %v391_v45, 0.0 }
 0x124   : > { %v396_v48 = vpop.f32.mrb[6].mxu0  ;;  %683 = vmatprep.subr.bf16.mxu1 %v682_v44  ;;  %v406_v54 = vmax.f32 %v393_v47, 0.0 }
 0x125   : > { %v397_v49 = vadd.f32 %v396_v48, %v297_v46  ;;  %v398_v50 = vpop.f32.mrb[7].mxu0  ;;  %685 = vmatpush1.bf16.msra.mxu1 %v684_v43 }
 0x126   : > { %v399_v51 = vadd.f32 %v398_v50, %v297_v46 }
 0x127   : > { %v407_v53 = vmax.f32 %v397_v49, 0.0 }
 0x128   : > { %v408_v55 = vmax.f32 %v399_v51, 0.0 }
 0x129   : > { %v688_v56 = vpack.c.bf16 %v407_v53, %v405_v52 }
 0x12a   : > { %v686_v57 = vpack.c.bf16 %v408_v55, %v406_v54 }
 0x12c   : > { %687 = vmatprep.subr.bf16.mxu1 %v686_v57 }
 0x12d   : > { %689 = vmatpush1.bf16.msra.mxu1 %v688_v56 }
 0x130   : > { %663 = vmatmul.mubr.msk.f32.vlgmr.msra.gmra.mrb[0].mxu1 %vm299_vm0, %v409_v58 }
 0x131   : > { %519 = vmatprep.mubr.f32.mxu1 %v877_v0 }
 0x134   : > { %664 = vmatmul.mubr.msk.f32.gmra.mrb[2].mxu1 %vm299_vm0, %v410_v59 }
 0x135   : > { %525 = vmatprep.mubr.f32.mxu1 %v877_v0 }
 0x138   : > { %665 = vmatmul.mubr.msk.f32.gmra.mrb[4].mxu1 %vm299_vm0, %v411_v60 }
 0x139   : > { %531 = vmatprep.mubr.f32.mxu1 %v877_v0 }
 0x13c   : > { %666 = vmatmul.mubr.msk.f32.gmra.mrb[6].mxu1 %vm299_vm0, %v412_v61 }
 0x203   : > { %v515_v63 = vpop.f32.mrb[0].mxu1 }
 0x204   : > { %v516_v1 = vadd.f32 %v515_v63, %v420_v62  ;;  %v517_v2 = vpop.f32.mrb[1].mxu1 }
 0x205   : > { %v518_v3 = vadd.f32 %v517_v2, %v420_v62 }
 0x206   : > { %538 = vst [vmem:[%s260_s12] sm:$0xff] %v516_v1 }
 0x207   : > { %539 = vst [vmem:[%s260_s12 + $0x8] sm:$0xff] %v518_v3  ;;  %v521_v5 = vpop.f32.mrb[2].mxu1 }
 0x208   : > { %v522_v6 = vadd.f32 %v521_v5, %v425_v4  ;;  %v523_v0 = vpop.f32.mrb[3].mxu1 }
 0x209   : > { %v524_v7 = vadd.f32 %v523_v0, %v425_v4 }
 0x20a   : > { %540 = vst [vmem:[%s260_s12 + $0x10] sm:$0xff] %v522_v6 }
 0x20b   : > { %541 = vst [vmem:[%s260_s12 + $0x18] sm:$0xff] %v524_v7  ;;  %v527_v9 = vpop.f32.mrb[4].mxu1 }
 0x20c   : > { %v528_v10 = vadd.f32 %v527_v9, %v430_v8  ;;  %v529_v11 = vpop.f32.mrb[5].mxu1 }
 0x20d   : > { %v530_v12 = vadd.f32 %v529_v11, %v430_v8 }
 0x20e   : > { %542 = vst [vmem:[%s260_s12 + $0x20] sm:$0xff] %v528_v10 }
 0x20f   : > { %543 = vst [vmem:[%s260_s12 + $0x28] sm:$0xff] %v530_v12  ;;  %v533_v14 = vpop.f32.mrb[6].mxu1 }
 0x210   : > { %v534_v15 = vadd.f32 %v533_v14, %v435_v13  ;;  %v535_v16 = vpop.f32.mrb[7].mxu1 }
 0x211   : > { %v536_v17 = vadd.f32 %v535_v16, %v435_v13 }
 0x212   : > { %544 = vst [vmem:[%s260_s12 + $0x30] sm:$0xff] %v534_v15 }
 0x213   : > { %545 = vst [vmem:[%s260_s12 + $0x38] sm:$0xff] %v536_v17 }
 0x214   : > { %803 = shalt.err (!%p800_p5)
}
 0x215   : > { %s804_s16 = scalar_lea.hbm %s1106_s27, 1024  ;;  %s808_s9 = scalar_lea.hbm %s1160_s5, 2048 }
 0x216   : > { %p805_p4 = scmp.ne.s32.totalorder %s1106_s27, %s804_s16  ;;  %p809_p12 = scmp.lt.u32.totalorder %s1106_s27, %s1160_s5 }
 0x217   : > { %p810_p1 = scmp.lt.u32.totalorder %s808_s9, %s804_s16  ;;  %p812_p8 = scmp.lt.u32.totalorder %s804_s16, %s1106_s27 }
 0x218   : > { %p806_p7 = pnand %p805_p4, %p1168_p9 }
 0x219   : > { %p811_p3 = por %p810_p1, %p809_p12 }
 0x21a   : > { %p807_p10 = pneg %p806_p7 }
 0x21b   : > { %p813_p11 = por %p812_p8, %p811_p3 }
 0x21d   : > { %p814_p0 = pnand %p813_p11, %p807_p10 }
 0x21f   : > { %817 = shalt.err (!%p814_p0)
}
 0x220   : > { %s880_s28 = smov 256   ;;  %s881_s25 = smov 16  }
 0x221   : > { %692 = dma.vmem_to_hbm [thread:$0]  (%p1168_p9), %s1101_s13, 1024, %s1106_s27, %s547_s21, %s880_s28, %s880_s28, %s881_s25  }
 0x222 PF: > { %s577_s10 = sand.u32 1, %s852_s18   ;;  %p1169_p6 = scmp.ne.s32.totalorder %s1165_s8, 0 }
 0x223   : > { %p1170_p13 = scmp.ge.s32.totalorder %s872_s23, 2  ;;  %s578_s11 = scalar_lea.sflag [#allocation4], %s577_s10 }
 0x225   : > { %p699_p2 = pnand %p1170_p13, %p1169_p6 }
 0x227   : > { %847 = dma.done.wait (!%p699_p2), %s578_s11, 1024  }
 0x228   : > { %849 = vsyncadd (!%p699_p2), %s578_s11, 4294966272  ;;  %s21_s23 = sadd.s32 1, %s872_s23   ;;  %s1171_s18 = smov %s856_s19 }
 0x229   : > { %p18_p5 = scmp.ge.s32.totalorder %s21_s23, 4   ;;  %s1172_s19 = smov %s860_s20 }
 0x22a   : > { %s1173_s20 = smov %s968_s7  ;;  %s1174_s21 = smov %s868_s22 }
 0x22b   : > { %s1175_s22 = smov %s1177_s26  ;;  %20 = sbr.rel (!%p18_p5) target bundleno = 6 (0x6), region = 85 }
 0x232   :  { %583 = vsyncpa [#allocation3], 1 }
 0x233   :  { %585 = vsyncpa [#allocation3 + $0x1], 1 }
 0x234   :  { %586 = vsyncpa [#allocation4], 1 }
 0x235   :  { %588 = vsyncpa [#allocation4 + $0x1], 1 }

</bundles_post_ra>
